<compile_context>
chip_gen: v7x
topology: tpu7x:2x2x1
jax: 0.10.0
libtpu: 0.0.40
codegen_flags: <defaults>
</compile_context>

<pallas_src>
import jax
import jax.numpy as jnp
from jax import lax
from jax.experimental import pallas as pl
from jax.experimental.pallas import tpu as pltpu


# ---------------------------------------------------------------------------
# Kernel body (shared by the single-shot and the batched/gridded paths)
# ---------------------------------------------------------------------------
def _camera_embedder_kernel(x_ref, w1_ref, b1_ref, w2_ref, b2_ref, o_ref):
    # x:  [tb, raw]        (input dtype, cast to bf16 for the MXU)
    # w1: [raw, emb] bf16  (pre-transposed [in, out] layout -> [M,K]@[K,N])
    # b1: [1, emb]   f32
    # w2: [emb, emb] bf16  (pre-transposed, K on dim 0)
    # b2: [1, emb]   f32
    x = x_ref[...].astype(jnp.bfloat16)

    # h = x @ w1  -> [tb, emb], f32 accumulation on the MXU.
    h = jnp.dot(x, w1_ref[...], preferred_element_type=jnp.float32)
    h = h + b1_ref[...]

    # SiLU in f32: sigmoid goes to the EUP, the multiply to the VPU.
    h = h * jax.nn.sigmoid(h)

    # out = h @ w2 -> [tb, emb], f32 accumulation on the MXU.
    out = jnp.dot(h.astype(jnp.bfloat16), w2_ref[...],
                  preferred_element_type=jnp.float32)
    out = out + b2_ref[...]

    o_ref[...] = out.astype(o_ref.dtype)


# ---------------------------------------------------------------------------
# One-time parameter preparation (call at init, NOT per forward step).
# ---------------------------------------------------------------------------
def prepare_camera_embedder_params(w1, b1, w2, b2):
    """Transpose PyTorch [out, in] weights to [in, out] ONCE, cast to bf16 for
    the MXU, and reshape biases to [1, embed] f32 rows."""
    embed_dim = w1.shape[0]
    return (jnp.asarray(w1, jnp.bfloat16).T,                       # [raw, emb]
            jnp.asarray(b1, jnp.float32).reshape(1, embed_dim),
            jnp.asarray(w2, jnp.bfloat16).T,                       # [emb, emb]
            jnp.asarray(b2, jnp.float32).reshape(1, embed_dim))


def _cost(B, raw_dim, embed_dim, x_itemsize, out_itemsize):
    flops = 2 * B * (raw_dim + embed_dim) * embed_dim
    bytes_accessed = int(
        B * raw_dim * x_itemsize                 # x in
        + raw_dim * embed_dim * 2                # w1 (bf16)
        + embed_dim * embed_dim * 2              # w2 (bf16)
        + 2 * embed_dim * 4                      # biases (f32)
        + B * embed_dim * out_itemsize)          # out
    return pl.CostEstimate(flops=flops,
                           transcendentals=B * embed_dim,   # sigmoid
                           bytes_accessed=bytes_accessed)


# ---------------------------------------------------------------------------
# Small-B path: single invocation, no grid, everything resident in VMEM.
# ---------------------------------------------------------------------------
def _camera_embedder_small(x, w1, b1, w2, b2, out_dtype):
    B, raw_dim = x.shape
    embed_dim = w1.shape[1]
    vmem = pl.BlockSpec(memory_space=pltpu.MemorySpace.VMEM)
    return pl.pallas_call(
        _camera_embedder_kernel,
        out_shape=jax.ShapeDtypeStruct((B, embed_dim), out_dtype),
        in_specs=[vmem] * 5,
        out_specs=vmem,
        cost_estimate=_cost(B, raw_dim, embed_dim, x.dtype.itemsize,
                            jnp.dtype(out_dtype).itemsize),
    )(x, w1, b1, w2, b2)


# ---------------------------------------------------------------------------
# Large-B path: grid over row tiles (ragged last block handled by Pallas —
# no wrapper-side pad/slice); weights/biases stay VMEM-resident (constant
# index_map); row axis "parallel" for megacore on v7x.
# ---------------------------------------------------------------------------
def _pick_row_tile(B, max_tile, min_tile=256):
    # Aim for >= ~4 grid tiles (>=2 per TensorCore on v7x megacore) when B
    # allows, but never below min_tile (long, lane-dense stores; amortizes the
    # ~0.35 us per-step overhead) and never above max_tile.
    target = -(-B // 4)
    target = -(-target // 8) * 8          # multiple of 8 sublanes
    return max(min_tile, min(max_tile, target))


def _camera_embedder_batched(x, w1, b1, w2, b2, out_dtype, *, row_tile=1024):
    B, raw_dim = x.shape
    embed_dim = w1.shape[1]
    tile = _pick_row_tile(B, row_tile)
    n_tiles = pl.cdiv(B, tile)

    return pl.pallas_call(
        _camera_embedder_kernel,
        out_shape=jax.ShapeDtypeStruct((B, embed_dim), out_dtype),
        grid=(n_tiles,),
        in_specs=[
            pl.BlockSpec((tile, raw_dim), lambda i: (i, 0)),
            pl.BlockSpec((raw_dim, embed_dim), lambda i: (0, 0)),
            pl.BlockSpec((1, embed_dim), lambda i: (0, 0)),
            pl.BlockSpec((embed_dim, embed_dim), lambda i: (0, 0)),
            pl.BlockSpec((1, embed_dim), lambda i: (0, 0)),
        ],
        out_specs=pl.BlockSpec((tile, embed_dim), lambda i: (i, 0)),
        compiler_params=pltpu.CompilerParams(
            dimension_semantics=("parallel",)),
        cost_estimate=_cost(B, raw_dim, embed_dim, x.dtype.itemsize,
                            jnp.dtype(out_dtype).itemsize),
    )(x, w1, b1, w2, b2)


def camera_embedder(x, w1_t, b1_row, w2_t, b2_row, *,
                    row_tile=1024, out_dtype=None):
    """x: [B, raw_dim]; params from prepare_camera_embedder_params().
    out_dtype: pass jnp.bfloat16 if the consumer accepts it (halves the
    dominant HBM write traffic in the batched regime); defaults to x.dtype."""
    out_dtype = x.dtype if out_dtype is None else jnp.dtype(out_dtype)
    if x.shape[0] <= row_tile:
        return _camera_embedder_small(x, w1_t, b1_row, w2_t, b2_row, out_dtype)
    return _camera_embedder_batched(x, w1_t, b1_row, w2_t, b2_row, out_dtype,
                                    row_tile=row_tile)


# ---------------------------------------------------------------------------
# References
# ---------------------------------------------------------------------------
def _ref_forward_f32(x, w1, b1, w2, b2):
    h = x @ w1.T + b1
    h = h * jax.nn.sigmoid(h)
    return h @ w2.T + b2


def _ref_forward_mixed(x, w1, b1, w2, b2):
    # Emulates the kernel's bf16-operand / f32-accumulate MXU path.
    rb = lambda a: a.astype(jnp.bfloat16).astype(jnp.float32)
    h = jnp.dot(rb(x), rb(w1).T, precision=lax.Precision.HIGHEST) + b1
    h = h * jax.nn.sigmoid(h)
    return jnp.dot(rb(h), rb(w2).T, precision=lax.Precision.HIGHEST) + b2


if __name__ == "__main__":
    # Camera raw feature dim 16 (flattened 3x4 extrinsics + 4 intrinsics),
    # embed dim 128, batch 8 — consistent with the LRM CameraEmbedder.
    B, RAW_DIM, EMBED_DIM = 8, 16, 128

    key = jax.random.PRNGKey(0)
    kx, kw1, kb1, kw2, kb2 = jax.random.split(key, 5)

    x = jax.random.normal(kx, (B, RAW_DIM), dtype=jnp.float32)

    # PyTorch nn.Linear-style uniform init (f32 master weights).
    lim1 = 1.0 / (RAW_DIM ** 0.5)
    lim2 = 1.0 / (EMBED_DIM ** 0.5)
    w1 = jax.random.uniform(kw1, (EMBED_DIM, RAW_DIM), jnp.float32, -lim1, lim1)
    b1 = jax.random.uniform(kb1, (EMBED_DIM,), jnp.float32, -lim1, lim1)
    w2 = jax.random.uniform(kw2, (EMBED_DIM, EMBED_DIM), jnp.float32, -lim2, lim2)
    b2 = jax.random.uniform(kb2, (EMBED_DIM,), jnp.float32, -lim2, lim2)

    # One-time parameter prep (init-time, outside the per-step hot path).
    params = prepare_camera_embedder_params(w1, b1, w2, b2)

    # --- small path (B=8, no grid) ---
    out = jax.block_until_ready(camera_embedder(x, *params))
    assert out.shape == (B, EMBED_DIM), out.shape
    ref_mixed = _ref_forward_mixed(x, w1, b1, w2, b2)
    ref_f32 = _ref_forward_f32(x, w1, b1, w2, b2)
    assert jnp.allclose(out, ref_mixed, atol=1e-4, rtol=1e-4), \
        "mismatch vs mixed-precision reference"
    assert jnp.allclose(out, ref_f32, atol=5e-2, rtol=5e-2), \
        "mismatch vs f32 reference"

    # --- batched path (many cameras/views per call; exercises ragged grid) ---
    B_big = 2500   # > row_tile, not a multiple of the tile -> ragged last block
    x_big = jax.random.normal(jax.random.PRNGKey(1), (B_big, RAW_DIM),
                              dtype=jnp.float32)
    out_big = jax.block_until_ready(camera_embedder(x_big, *params))
    assert out_big.shape == (B_big, EMBED_DIM), out_big.shape
    ref_big = _ref_forward_mixed(x_big, w1, b1, w2, b2)
    assert jnp.allclose(out_big, ref_big, atol=1e-4, rtol=1e-4), \
        "batched path mismatch vs mixed-precision reference"

    # --- bf16 output option (cuts dominant HBM write traffic when allowed) ---
    out_bf16 = jax.block_until_ready(
        camera_embedder(x_big, *params, out_dtype=jnp.bfloat16))
    assert out_bf16.dtype == jnp.bfloat16 and out_bf16.shape == (B_big, EMBED_DIM)
    assert jnp.allclose(out_bf16.astype(jnp.float32), ref_big,
                        atol=5e-2, rtol=5e-2), \
        "bf16-output path mismatch vs mixed-precision reference"

    print("KERNEL_OK")
</pallas_src>

<mosaic_0001>
module attributes {stable_mosaic.version = 11 : i64} {
  func.func @_camera_embedder_kernel(%arg0: memref<8x16xf32, #tpu.memory_space<vmem>>, %arg1: memref<16x128xbf16, #tpu.memory_space<vmem>>, %arg2: memref<1x128xf32, #tpu.memory_space<vmem>>, %arg3: memref<128x128xbf16, #tpu.memory_space<vmem>>, %arg4: memref<1x128xf32, #tpu.memory_space<vmem>>, %arg5: memref<8x128xf32, #tpu.memory_space<vmem>>) attributes {dimension_semantics = [], scalar_prefetch = 0 : i64, scratch_operands = 0 : i64, tpu.core_type = #tpu.core_type<tc>} {
    %c0 = arith.constant 0 : index
    %c0_0 = arith.constant 0 : index
    %0 = vector.load %arg0[%c0, %c0_0] : memref<8x16xf32, #tpu.memory_space<vmem>>, vector<8x16xf32>
    %1 = arith.truncf %0 : vector<8x16xf32> to vector<8x16xbf16>
    %c0_1 = arith.constant 0 : index
    %c0_2 = arith.constant 0 : index
    %2 = vector.load %arg1[%c0_1, %c0_2] : memref<16x128xbf16, #tpu.memory_space<vmem>>, vector<16x128xbf16>
    %cst = arith.constant dense<0.000000e+00> : vector<8x128xf32>
    %3 = tpu.matmul %1, %2, %cst {dimension_numbers = #tpu.dot_dimension_numbers<[1], [0], [0], [1], [0, 0, 1, 1], [], []>} : vector<8x16xbf16>, vector<16x128xbf16>, vector<8x128xf32> -> vector<8x128xf32>
    %c0_3 = arith.constant 0 : index
    %c0_4 = arith.constant 0 : index
    %4 = vector.load %arg2[%c0_3, %c0_4] : memref<1x128xf32, #tpu.memory_space<vmem>>, vector<1x128xf32>
    %5 = vector.broadcast %4 : vector<1x128xf32> to vector<8x128xf32>
    %6 = arith.addf %3, %5 : vector<8x128xf32>
    %7 = arith.negf %6 : vector<8x128xf32>
    %8 = math.exp %7 : vector<8x128xf32>
    %cst_5 = arith.constant 1.000000e+00 : f32
    %9 = vector.broadcast %cst_5 : f32 to vector<8x128xf32>
    %10 = arith.addf %9, %8 : vector<8x128xf32>
    %11 = arith.divf %9, %10 : vector<8x128xf32>
    %12 = arith.mulf %6, %11 : vector<8x128xf32>
    %13 = arith.truncf %12 : vector<8x128xf32> to vector<8x128xbf16>
    %c0_6 = arith.constant 0 : index
    %c0_7 = arith.constant 0 : index
    %14 = vector.load %arg3[%c0_6, %c0_7] : memref<128x128xbf16, #tpu.memory_space<vmem>>, vector<128x128xbf16>
    %cst_8 = arith.constant dense<0.000000e+00> : vector<8x128xf32>
    %15 = tpu.matmul %13, %14, %cst_8 {dimension_numbers = #tpu.dot_dimension_numbers<[1], [0], [0], [1], [0, 0, 1, 1], [], []>} : vector<8x128xbf16>, vector<128x128xbf16>, vector<8x128xf32> -> vector<8x128xf32>
    %c0_9 = arith.constant 0 : index
    %c0_10 = arith.constant 0 : index
    %16 = vector.load %arg4[%c0_9, %c0_10] : memref<1x128xf32, #tpu.memory_space<vmem>>, vector<1x128xf32>
    %17 = vector.broadcast %16 : vector<1x128xf32> to vector<8x128xf32>
    %18 = arith.addf %15, %17 : vector<8x128xf32>
    %c0_11 = arith.constant 0 : index
    %c0_12 = arith.constant 0 : index
    %19 = vector.load %arg5[%c0_11, %c0_12] : memref<8x128xf32, #tpu.memory_space<vmem>>, vector<8x128xf32>
    tpu.vector_store %arg5[%c0_11, %c0_12], %18 {strides = array<i32>} : memref<8x128xf32, #tpu.memory_space<vmem>>, vector<8x128xf32>,
    return
  }
}

</mosaic_0001>

<bundles_post_ra>
// kernel: tpu_custom_call.1
= control target key start
LH: loop header
LB: loop body
LE: loop exit
PB: predicated region body
PF: predicated region fallthrough
CT: control target
= control target key end

     0   :  { %10 = vsyncpa [#allocation3], 0  ;;  %s521_s0 = inlined_call_operand.hbm [shape: f32[8,16], index: 0, kind: input, shape index: {}]   ;;  %s522_s1 = inlined_call_operand.hbm [shape: bf16[16,128], index: 1, kind: input, shape index: {}]   ;;  %s523_s2 = inlined_call_operand.vmem [shape: f32[1,128], index: 2, kind: input, shape index: {}]   ;;  %s524_s3 = inlined_call_operand.hbm [shape: bf16[128,128], index: 3, kind: input, shape index: {}]   ;;  %s525_s4 = inlined_call_operand.vmem [shape: f32[1,128], index: 4, kind: input, shape index: {}]   ;;  %s526_s5 = inlined_call_operand.hbm [shape: f32[8,128], index: 5, kind: output, shape index: {}]  }
   0x1   :  { %11 = vsyncpa [#allocation6], 0 }
   0x2   :  { %12 = vsyncpa [#allocation4], 0  ;;  %s423_s18 = smov [#allocation5]   ;;  %s329_s22 = scalar_lea.hbm %s522_s1, 128 }
   0x3   :  { %s28_s19 = sshll.u32 %s423_s18, 4  ;;  %p330_p0 = scmp.ne.s32.totalorder %s522_s1, %s329_s22  ;;  %s29_s19 = int_to_ptr.vmem [resolvable:$true] %s28_s19 }
   0x4   :  { %p333_p1 = scmp.lt.u32.totalorder %s329_s22, %s522_s1 }
   0x6   :  { %p335_p2 = pnand %p333_p1, %p330_p0 }
   0x8   :  { %338 = shalt.err (!%p335_p2)
}
   0x9   :  { %s339_s27 = scalar_lea.vmem %s29_s19, 128  ;;  %p344_p4 = scmp.lt.s32.totalorder %s29_s19, %s29_s19 }
   0xa   :  { %p340_p3 = scmp.ne.s32.totalorder %s29_s19, %s339_s27  ;;  %p345_p5 = scmp.lt.s32.totalorder %s339_s27, %s339_s27 }
   0xc   :  { %p346_p6 = por %p345_p5, %p344_p4 }
   0xe   :  { %p347_p7 = pnand %p346_p6, %p340_p3 }
  0x10   :  { %350 = shalt.err (!%p347_p7)
}
  0x11   :  { %s424_s28 = smov 64   ;;  %s425_s29 = smov 4  }
  0x12   :  { %34 = dma.hbm_to_vmem [thread:$0]  %s522_s1, 128, %s29_s19, [#allocation6], %s424_s28, %s424_s28, %s425_s29  }
  0x13   :  { %s426_s7 = smov [#allocation2]   ;;  %s427_s9 = smov [#allocation7]  }
  0x14   :  { %s19_s8 = sshll.u32 %s426_s7, 4  ;;  %s42_s10 = sshll.u32 %s427_s9, 4  ;;  %s20_s8 = int_to_ptr.vmem [resolvable:$true] %s19_s8  ;;  %s43_s10 = int_to_ptr.vmem [resolvable:$true] %s42_s10 }
  0x15   :  { %s351_s13 = scalar_lea.hbm %s521_s0, 128 }
  0x16   :  { %p352_p8 = scmp.ne.s32.totalorder %s521_s0, %s351_s13  ;;  %p355_p9 = scmp.lt.u32.totalorder %s351_s13, %s521_s0 }
  0x18   :  { %p357_p10 = pnand %p355_p9, %p352_p8 }
  0x1a   :  { %360 = shalt.err (!%p357_p10)
}
  0x1b   :  { %s361_s1 = scalar_lea.vmem %s20_s8, 128  ;;  %p366_p12 = scmp.lt.s32.totalorder %s20_s8, %s20_s8 }
  0x1c   :  { %p362_p11 = scmp.ne.s32.totalorder %s20_s8, %s361_s1  ;;  %p367_p13 = scmp.lt.s32.totalorder %s361_s1, %s361_s1 }
  0x1e   :  { %p368_p0 = por %p367_p13, %p366_p12 }
  0x20   :  { %p369_p1 = pnand %p368_p0, %p362_p11 }
  0x22   :  { %372 = shalt.err (!%p369_p1)
}
  0x23   :  { %22 = dma.hbm_to_vmem [thread:$0]  %s521_s0, 128, %s20_s8, [#allocation3]  }
  0x24   :  { %s373_s22 = scalar_lea.hbm %s524_s3, 1024 }
  0x25   :  { %p374_p2 = scmp.ne.s32.totalorder %s524_s3, %s373_s22  ;;  %p377_p3 = scmp.lt.u32.totalorder %s373_s22, %s524_s3 }
  0x27   :  { %p379_p4 = pnand %p377_p3, %p374_p2 }
  0x29   :  { %382 = shalt.err (!%p379_p4)
}
  0x2a   :  { %s383_s27 = scalar_lea.vmem %s43_s10, 1024  ;;  %p388_p6 = scmp.lt.s32.totalorder %s43_s10, %s43_s10 }
  0x2b   :  { %p384_p5 = scmp.ne.s32.totalorder %s43_s10, %s383_s27  ;;  %p389_p7 = scmp.lt.s32.totalorder %s383_s27, %s383_s27 }
  0x2d   :  { %p390_p8 = por %p389_p7, %p388_p6 }
  0x2f   :  { %p391_p9 = pnand %p390_p8, %p384_p5 }
  0x31   :  { %394 = shalt.err (!%p391_p9)
}
  0x32   :  { %48 = dma.hbm_to_vmem [thread:$0]  %s524_s3, 1024, %s43_s10, [#allocation6], %s424_s28, %s424_s28, %s425_s29  }
  0x33   :  { %417 = dma.done.wait [#allocation3], 128  }
  0x34   :  { %418 = vsyncadd [#allocation3], 4294967168 }
  0x35   :  { %419 = dma.done.wait [#allocation6], 1152  }
  0x36   :  { %420 = vsyncadd [#allocation6], 4294966144  ;;  %v428_v0 = vmov 0.0   ;;  %vm429_vm0 = vmmov 0   ;;  %v316_v1 = vld [vmem:[#allocation5] sm:$0xff]   ;;  %v61_v2 = vld [vmem:[#allocation2] sm:$0xff] }
  0x37   :  { %282 = vmatprep.subr.bf16.mxu0 %v428_v0  ;;  %284 = vmatprep.mubr.msk.bf16.mxu0 %vm429_vm0, %v428_v0  ;;  %vm78_vm1 = vcmask 130048   ;;  %v62_v3 = vpack.c.bf16 %v61_v2, %v61_v2  ;;  %v317_v4 = vld [vmem:[#allocation7] sm:$0xff]   ;;  %v318_v5 = vld [vmem:[#allocation7 + $0x8] sm:$0xff]   ;;  %v319_v6 = vld [vmem:[#allocation7 + $0x10] sm:$0xff]   ;;  %s430_s7 = smov [#allocation8]  }
  0x38   :  { %288 = vmatprep.subr.bf16.mxu1 %v428_v0  ;;  %304 = vmatprep.mubr.msk.bf16.mxu1 %vm429_vm0, %v428_v0  ;;  %v320_v7 = vld [vmem:[#allocation7 + $0x18] sm:$0xff]   ;;  %v321_v8 = vld [vmem:[#allocation7 + $0x20] sm:$0xff]   ;;  %v322_v9 = vld [vmem:[#allocation7 + $0x28] sm:$0xff]  }
  0x39   :  { %283 = vmatpush3.bf16.msra.mxu0 %v316_v1  ;;  %289 = vmatpush3.bf16.msra.mxu1 %v317_v4  ;;  %v323_v10 = vld [vmem:[#allocation7 + $0x30] sm:$0xff]   ;;  %v324_v11 = vld [vmem:[#allocation7 + $0x38] sm:$0xff]  }
  0x3a   :  { %290 = vmatprep.subr.bf16.mxu1 %v428_v0  ;;  %v258_v12 = vld [vmem:[%s523_s2] ss:$0 sm:$0xff]  ;;  %s248_s2 = sshll.u32 %s430_s7, 4  ;;  %s249_s2 = int_to_ptr.vmem [resolvable:$true] %s248_s2 }
  0x3b   :  { %v262_v24 = vld [vmem:[%s525_s4] ss:$0 sm:$0xff]  ;;  %s395_s8 = scalar_lea.vmem %s249_s2, 128  ;;  %p400_p11 = scmp.lt.s32.totalorder %s249_s2, %s249_s2 }
  0x3c   :  { %285 = vmatmul.mubr.msk.bf16.vlgmr.msra.gmra.mrb[0].mxu0 %vm78_vm1, %v62_v3  ;;  %p396_p10 = scmp.ne.s32.totalorder %s249_s2, %s395_s8  ;;  %p401_p12 = scmp.lt.s32.totalorder %s395_s8, %s395_s8 }
  0x3d   :  { %291 = vmatpush3.bf16.msra.mxu1 %v318_v5 }
  0x3e   :  { %292 = vmatprep.subr.bf16.mxu1 %v428_v0  ;;  %p402_p13 = por %p401_p12, %p400_p11 }
  0x40   :  { %p403_p0 = pnand %p402_p13, %p396_p10 }
  0x41   :  { %293 = vmatpush3.bf16.msra.mxu1 %v319_v6 }
  0x42   :  { %294 = vmatprep.subr.bf16.mxu1 %v428_v0 }
  0x45   :  { %295 = vmatpush3.bf16.msra.mxu1 %v320_v7 }
  0x46   :  { %296 = vmatprep.subr.bf16.mxu1 %v428_v0 }
  0x49   :  { %297 = vmatpush3.bf16.msra.mxu1 %v321_v8 }
  0x4a   :  { %298 = vmatprep.subr.bf16.mxu1 %v428_v0 }
  0x4d   :  { %299 = vmatpush3.bf16.msra.mxu1 %v322_v9 }
  0x4e   :  { %300 = vmatprep.subr.bf16.mxu1 %v428_v0 }
  0x51   :  { %301 = vmatpush3.bf16.msra.mxu1 %v323_v10 }
  0x52   :  { %302 = vmatprep.subr.bf16.mxu1 %v428_v0 }
  0x55   :  { %303 = vmatpush3.bf16.msra.mxu1 %v324_v11 }
 0x10f   :  { %v116_v13 = vpop.f32.mrb[0].mxu0 }
 0x110   :  { %v117_v14 = vadd.f32 %v258_v12, %v116_v13  ;;  %v286_v15 = vpop.f32.mrb[1].mxu0 }
 0x111   :  { %v119_v16 = vpop.f32.mrb[2].mxu0 }
 0x112   :  { %v261_v17 = vmul.f32 -1.442695, %v117_v14  ;;  %v287_v18 = vpop.f32.mrb[3].mxu0 }
 0x114   :  { %325 = vpow2.f32 %v261_v17 }
 0x11e   :  { %v326_v19 = vpop.eup %325 }
 0x11f   :  { %v125_v20 = vadd.f32 1.0, %v326_v19 }
 0x121   :  { %327 = vrcp.f32 %v125_v20 }
 0x12b   :  { %v328_v21 = vpop.eup %327 }
 0x12c   :  { %v128_v22 = vmul.f32 %v328_v21, %v117_v14 }
 0x12e   :  { %v129_v23 = vpack.c.bf16 %v128_v22, %v128_v22 }
 0x130   :  { %305 = vmatmul.mubr.bf16.vlgmr.msra.gmra.mrb[0].mxu1 %v129_v23 }
 0x203   :  { %v235_v25 = vpop.f32.mrb[0].mxu1 }
 0x204   :  { %v236_v26 = vadd.f32 %v262_v24, %v235_v25  ;;  %v306_v27 = vpop.f32.mrb[1].mxu1 }
 0x205   :  { %v238_v28 = vpop.f32.mrb[2].mxu1 }
 0x206   :  { %241 = vst [vmem:[#allocation8] sm:$0xff] %v236_v26  ;;  %v307_v29 = vpop.f32.mrb[3].mxu1 }
 0x207   :  { %406 = shalt.err (!%p403_p0)
}
 0x208   :  { %s407_s4 = scalar_lea.hbm %s526_s5, 128 }
 0x209   :  { %p408_p1 = scmp.ne.s32.totalorder %s526_s5, %s407_s4  ;;  %p411_p2 = scmp.lt.u32.totalorder %s407_s4, %s526_s5 }
 0x20b   :  { %p413_p3 = pnand %p411_p2, %p408_p1 }
 0x20d   :  { %416 = shalt.err (!%p413_p3)
}
 0x20e   :  { %251 = dma.vmem_to_hbm [thread:$0]  %s249_s2, 128, %s526_s5, [#allocation4]  }
 0x20f   :  { %421 = dma.done.wait [#allocation4], 128  }
 0x210   :  { %422 = vsyncadd [#allocation4], 4294967168 }
 0x211   :  { %255 = vsyncpa [#allocation3], 1 }
 0x212   :  { %256 = vsyncpa [#allocation6], 1 }
 0x213   :  { %257 = vsyncpa [#allocation4], 1 }

</bundles_post_ra>
